<compile_context>
chip_gen: v6e
topology: v6e:2x2x1
jax: 0.10.0
libtpu: 0.0.40
codegen_flags: <defaults>
</compile_context>

<pallas_src>
import functools

import jax
import jax.numpy as jnp
from jax.experimental import pallas as pl
from jax.experimental.pallas import tpu as pltpu


def _round_up(x, m):
    return (x + m - 1) // m * m


def _device_defaults():
    """(default_use_bf16, vmem_cap_bytes) derived from the local TPU generation."""
    kind = ""
    try:
        kind = jax.devices()[0].device_kind.lower()
    except Exception:
        pass
    is_v5e = ("v5e" in kind) or ("v5 lite" in kind) or ("v5lite" in kind)
    # v5e/v6e have 128 MiB VMEM per core -> allow ~100 MiB; v7x only has 64 MiB.
    vmem_cap = (100 << 20) if ("v5" in kind or "v6" in kind) else (64 << 20)
    return is_v5e, vmem_cap


def prepare_params(params, *, use_bf16=None):
    """Pad/cast the (in, out) weights ONCE; reuse the result across forward calls.

    Output feature widths are zero-padded to multiples of 128 lanes (exact);
    the first layer's contraction dim stays at the raw flattened input width so
    x never needs lane padding.
    """
    if use_bf16 is None:
        use_bf16, _ = _device_defaults()        # bf16 MXU by default on v5e
    compute_dtype = jnp.bfloat16 if use_bf16 else jnp.float32

    prepared = []
    k_prev = params[0][0].shape[0]              # raw flattened input width (unpadded)
    for w, b in params:
        k, n = w.shape
        n_pad = _round_up(n, 128)
        w_pad = (jnp.zeros((k_prev, n_pad), jnp.float32)
                 .at[:k, :n].set(w.astype(jnp.float32))
                 .astype(compute_dtype))
        b_pad = jnp.zeros((1, n_pad), jnp.float32).at[0, :n].set(b.astype(jnp.float32))
        prepared.append((w_pad, b_pad))
        k_prev = n_pad
    return prepared


def _mlp_kernel(*refs, num_layers, compute_dtype):
    # refs = (x_ref, w1, b1, w2, b2, ..., wL, bL, o_ref); o_ref block is (tm, 1).
    x_ref, o_ref = refs[0], refs[-1]
    wb = refs[1:-1]

    h = x_ref[...]                                         # (tm, in_dim)
    for layer in range(num_layers):
        w = wb[2 * layer][...]                             # (K, N_pad) compute_dtype
        b = wb[2 * layer + 1][...]                         # (1, N_pad) float32
        acc = jnp.dot(h.astype(compute_dtype), w,
                      preferred_element_type=jnp.float32)  # MXU, f32 accumulation
        h = acc + b                                        # bias / ReLU on VPU in f32
        if layer < num_layers - 1:                         # no ReLU after last Linear
            h = jnp.maximum(h, 0.0)
    # Only the real output column is written back (lane-1 store, 128x less HBM).
    o_ref[...] = h[:, :o_ref.shape[1]].astype(o_ref.dtype)


def mlp_forward(x, prepared, *, tile_m=4096, vmem_cap=None):
    """x: (batch, ...).  prepared: output of prepare_params()."""
    batch = x.shape[0]
    x2d = x.reshape(batch, -1)                             # nn.Flatten()
    in_dim = x2d.shape[1]
    assert in_dim == prepared[0][0].shape[0], "input width mismatch with params"

    compute_dtype = prepared[0][0].dtype
    x2d = x2d.astype(compute_dtype)                        # no-op for f32; halves DMA for bf16

    if vmem_cap is None:
        _, vmem_cap = _device_defaults()

    # Large row tile (amortizes the ~0.35 us per-grid-step overhead), but capped
    # so the grid has at least two steps whenever batch > 8 -> both v7x TCs busy.
    tm = max(8, min(tile_m, _round_up(-(-batch // 2), 8)))
    grid = (pl.cdiv(batch, tm),)

    flat_args = [x2d]
    in_specs = [pl.BlockSpec((tm, in_dim), lambda i: (i, 0))]
    for w_pad, b_pad in prepared:
        flat_args += [w_pad, b_pad]
        # constant index_maps -> weights/biases stay VMEM-resident across steps
        in_specs.append(pl.BlockSpec(w_pad.shape, lambda i: (0, 0)))
        in_specs.append(pl.BlockSpec(b_pad.shape, lambda i: (0, 0)))

    # VMEM budget: resident weights/biases (+pipeline copy headroom), double-
    # buffered x/out tiles, activation temporaries, fixed headroom.
    # TODO(synk): for very wide hidden layers on v7x (64 MiB VMEM) add a K grid
    # axis with an f32 accumulator instead of keeping all weights resident.
    w_bytes = sum(a.size * a.dtype.itemsize for a in flat_args[1:])
    max_width = max(w.shape[1] for w, _ in prepared)
    act_bytes = 4 * tm * max_width
    tile_bytes = 2 * (tm * in_dim * jnp.dtype(compute_dtype).itemsize + tm * 4)
    vmem_limit = int(min(max(2 * w_bytes + tile_bytes + 3 * act_bytes + (4 << 20),
                             32 << 20),
                         vmem_cap))

    kernel = functools.partial(_mlp_kernel,
                               num_layers=len(prepared),
                               compute_dtype=compute_dtype)

    out = pl.pallas_call(
        kernel,
        out_shape=jax.ShapeDtypeStruct((batch, 1), jnp.float32),
        grid=grid,
        in_specs=in_specs,
        out_specs=pl.BlockSpec((tm, 1), lambda i: (i, 0)),
        compiler_params=pltpu.CompilerParams(
            dimension_semantics=("parallel",),
            vmem_limit_bytes=vmem_limit),
    )(*flat_args)

    return out[:, 0]                                       # torch.flatten -> (batch,)


def init_params(key, input_size, hidden_layers):
    """Deterministic init mirroring the module's layer shapes ((in, out) weights)."""
    sizes = [input_size] + list(hidden_layers) + [1]
    params = []
    for i in range(len(sizes) - 1):
        key, kw, kb = jax.random.split(key, 3)
        fan_in, fan_out = sizes[i], sizes[i + 1]
        bound = 1.0 / jnp.sqrt(fan_in)
        w = jax.random.uniform(kw, (fan_in, fan_out), jnp.float32, -bound, bound)
        b = jax.random.uniform(kb, (fan_out,), jnp.float32, -bound, bound)
        params.append((w, b))
    return params


if __name__ == "__main__":
    key = jax.random.PRNGKey(0)
    kx, kp = jax.random.split(key)

    batch = 20
    # input that will be flattened: (batch, 4, 8) -> input_size = 32
    x = jax.random.normal(kx, (batch, 4, 8), dtype=jnp.float32)
    input_size = 4 * 8
    hidden_layers = [32, 16]
    params = init_params(kp, input_size, hidden_layers)

    # pure-JAX reference (unpadded)
    h = x.reshape(batch, -1)
    for i, (w, b) in enumerate(params):
        h = h @ w + b
        if i < len(params) - 1:
            h = jnp.maximum(h, 0.0)
    ref = h.reshape(-1)

    # f32 path (weights padded/cast once; default tile policy gives a 2-step grid here)
    prepared_f32 = prepare_params(params, use_bf16=False)
    out = mlp_forward(x, prepared_f32)
    jax.block_until_ready(out)
    assert out.shape == (batch,)
    assert jnp.allclose(out, ref, atol=1e-4, rtol=1e-4), \
        float(jnp.max(jnp.abs(out - ref)))

    # bf16 MXU path (f32 accumulation) -- looser tolerance
    prepared_bf16 = prepare_params(params, use_bf16=True)
    out_bf16 = mlp_forward(x, prepared_bf16)
    jax.block_until_ready(out_bf16)
    assert out_bf16.shape == (batch,)
    assert jnp.allclose(out_bf16, ref, atol=5e-2, rtol=5e-2), \
        float(jnp.max(jnp.abs(out_bf16 - ref)))

    print("KERNEL_OK")
</pallas_src>

<mosaic_0001>
module attributes {stable_mosaic.version = 11 : i64} {
  func.func @_mlp_kernel(%arg0: i32, %arg1: memref<16x32xf32, #tpu.memory_space<vmem>>, %arg2: memref<32x128xf32, #tpu.memory_space<vmem>>, %arg3: memref<1x128xf32, #tpu.memory_space<vmem>>, %arg4: memref<128x128xf32, #tpu.memory_space<vmem>>, %arg5: memref<1x128xf32, #tpu.memory_space<vmem>>, %arg6: memref<128x128xf32, #tpu.memory_space<vmem>>, %arg7: memref<1x128xf32, #tpu.memory_space<vmem>>, %arg8: memref<16x1xf32, #tpu.memory_space<vmem>>) attributes {dimension_semantics = [#tpu.dimension_semantics<parallel>], iteration_bounds = array<i64: 2>, scalar_prefetch = 0 : i64, scratch_operands = 0 : i64, tpu.core_type = #tpu.core_type<tc>, window_params = [{transform_indices = @transform_0, window_bounds = array<i64: 16, 32>}, {pipeline_mode = #tpu.pipeline_mode<synchronous>, transform_indices = @transform_1, window_bounds = array<i64: 32, 128>}, {pipeline_mode = #tpu.pipeline_mode<synchronous>, transform_indices = @transform_2, window_bounds = array<i64: 1, 128>}, {pipeline_mode = #tpu.pipeline_mode<synchronous>, transform_indices = @transform_3, window_bounds = array<i64: 128, 128>}, {pipeline_mode = #tpu.pipeline_mode<synchronous>, transform_indices = @transform_4, window_bounds = array<i64: 1, 128>}, {pipeline_mode = #tpu.pipeline_mode<synchronous>, transform_indices = @transform_5, window_bounds = array<i64: 128, 128>}, {pipeline_mode = #tpu.pipeline_mode<synchronous>, transform_indices = @transform_6, window_bounds = array<i64: 1, 128>}, {transform_indices = @transform_7, window_bounds = array<i64: 16, 1>}]} {
    %c0 = arith.constant 0 : index
    %c0_0 = arith.constant 0 : index
    %0 = vector.load %arg1[%c0, %c0_0] : memref<16x32xf32, #tpu.memory_space<vmem>>, vector<16x32xf32>
    %c0_1 = arith.constant 0 : index
    %c0_2 = arith.constant 0 : index
    %1 = vector.load %arg2[%c0_1, %c0_2] : memref<32x128xf32, #tpu.memory_space<vmem>>, vector<32x128xf32>
    %c0_3 = arith.constant 0 : index
    %c0_4 = arith.constant 0 : index
    %2 = vector.load %arg3[%c0_3, %c0_4] : memref<1x128xf32, #tpu.memory_space<vmem>>, vector<1x128xf32>
    %cst = arith.constant dense<0.000000e+00> : vector<16x128xf32>
    %3 = tpu.matmul %0, %1, %cst {dimension_numbers = #tpu.dot_dimension_numbers<[1], [0], [0], [1], [0, 0, 1, 1], [], []>} : vector<16x32xf32>, vector<32x128xf32>, vector<16x128xf32> -> vector<16x128xf32>
    %4 = vector.broadcast %2 : vector<1x128xf32> to vector<16x128xf32>
    %5 = arith.addf %3, %4 : vector<16x128xf32>
    %cst_5 = arith.constant 0.000000e+00 : f32
    %6 = vector.broadcast %cst_5 : f32 to vector<16x128xf32>
    %7 = arith.maximumf %5, %6 : vector<16x128xf32>
    %c0_6 = arith.constant 0 : index
    %c0_7 = arith.constant 0 : index
    %8 = vector.load %arg4[%c0_6, %c0_7] : memref<128x128xf32, #tpu.memory_space<vmem>>, vector<128x128xf32>
    %c0_8 = arith.constant 0 : index
    %c0_9 = arith.constant 0 : index
    %9 = vector.load %arg5[%c0_8, %c0_9] : memref<1x128xf32, #tpu.memory_space<vmem>>, vector<1x128xf32>
    %cst_10 = arith.constant dense<0.000000e+00> : vector<16x128xf32>
    %10 = tpu.matmul %7, %8, %cst_10 {dimension_numbers = #tpu.dot_dimension_numbers<[1], [0], [0], [1], [0, 0, 1, 1], [], []>} : vector<16x128xf32>, vector<128x128xf32>, vector<16x128xf32> -> vector<16x128xf32>
    %11 = vector.broadcast %9 : vector<1x128xf32> to vector<16x128xf32>
    %12 = arith.addf %10, %11 : vector<16x128xf32>
    %cst_11 = arith.constant 0.000000e+00 : f32
    %13 = vector.broadcast %cst_11 : f32 to vector<16x128xf32>
    %14 = arith.maximumf %12, %13 : vector<16x128xf32>
    %c0_12 = arith.constant 0 : index
    %c0_13 = arith.constant 0 : index
    %15 = vector.load %arg6[%c0_12, %c0_13] : memref<128x128xf32, #tpu.memory_space<vmem>>, vector<128x128xf32>
    %c0_14 = arith.constant 0 : index
    %c0_15 = arith.constant 0 : index
    %16 = vector.load %arg7[%c0_14, %c0_15] : memref<1x128xf32, #tpu.memory_space<vmem>>, vector<1x128xf32>
    %cst_16 = arith.constant dense<0.000000e+00> : vector<16x128xf32>
    %17 = tpu.matmul %14, %15, %cst_16 {dimension_numbers = #tpu.dot_dimension_numbers<[1], [0], [0], [1], [0, 0, 1, 1], [], []>} : vector<16x128xf32>, vector<128x128xf32>, vector<16x128xf32> -> vector<16x128xf32>
    %18 = vector.broadcast %16 : vector<1x128xf32> to vector<16x128xf32>
    %19 = arith.addf %17, %18 : vector<16x128xf32>
    %20 = vector.extract_strided_slice %19 {offsets = [0, 0], sizes = [16, 1], strides = [1, 1]} : vector<16x128xf32> to vector<16x1xf32>
    %c0_17 = arith.constant 0 : index
    %c0_18 = arith.constant 0 : index
    %21 = vector.load %arg8[%c0_17, %c0_18] : memref<16x1xf32, #tpu.memory_space<vmem>>, vector<16x1xf32>
    tpu.vector_store %arg8[%c0_17, %c0_18], %20 {strides = array<i32>} : memref<16x1xf32, #tpu.memory_space<vmem>>, vector<16x1xf32>,
    return
  }
  func.func @transform_0(%arg0: i32) -> (i32, i32) {
    %c0_i32 = arith.constant 0 : i32
    %c0_i32_0 = arith.constant 0 : i32
    return %arg0, %c0_i32 : i32, i32
  }
  func.func @transform_1(%arg0: i32) -> (i32, i32) {
    %c0_i32 = arith.constant 0 : i32
    %c0_i32_0 = arith.constant 0 : i32
    %c0_i32_1 = arith.constant 0 : i32
    return %c0_i32, %c0_i32_0 : i32, i32
  }
  func.func @transform_2(%arg0: i32) -> (i32, i32) {
    %c0_i32 = arith.constant 0 : i32
    %c0_i32_0 = arith.constant 0 : i32
    %c0_i32_1 = arith.constant 0 : i32
    return %c0_i32, %c0_i32_0 : i32, i32
  }
  func.func @transform_3(%arg0: i32) -> (i32, i32) {
    %c0_i32 = arith.constant 0 : i32
    %c0_i32_0 = arith.constant 0 : i32
    %c0_i32_1 = arith.constant 0 : i32
    return %c0_i32, %c0_i32_0 : i32, i32
  }
  func.func @transform_4(%arg0: i32) -> (i32, i32) {
    %c0_i32 = arith.constant 0 : i32
    %c0_i32_0 = arith.constant 0 : i32
    %c0_i32_1 = arith.constant 0 : i32
    return %c0_i32, %c0_i32_0 : i32, i32
  }
  func.func @transform_5(%arg0: i32) -> (i32, i32) {
    %c0_i32 = arith.constant 0 : i32
    %c0_i32_0 = arith.constant 0 : i32
    %c0_i32_1 = arith.constant 0 : i32
    return %c0_i32, %c0_i32_0 : i32, i32
  }
  func.func @transform_6(%arg0: i32) -> (i32, i32) {
    %c0_i32 = arith.constant 0 : i32
    %c0_i32_0 = arith.constant 0 : i32
    %c0_i32_1 = arith.constant 0 : i32
    return %c0_i32, %c0_i32_0 : i32, i32
  }
  func.func @transform_7(%arg0: i32) -> (i32, i32) {
    %c0_i32 = arith.constant 0 : i32
    %c0_i32_0 = arith.constant 0 : i32
    return %arg0, %c0_i32 : i32, i32
  }
}

</mosaic_0001>

<bundles_post_ra>
// kernel: tpu_custom_call.1
= control target key start
LH: loop header
LB: loop body
LE: loop exit
PB: predicated region body
PF: predicated region fallthrough
CT: control target
= control target key end

     0   :  { %12 = vsyncpa [#allocation3], 0  ;;  %s1683_s0 = inlined_call_operand.hbm [shape: f32[20,32], index: 0, kind: input, shape index: {}]   ;;  %s1684_s1 = inlined_call_operand.hbm [shape: f32[32,128], index: 1, kind: input, shape index: {}]   ;;  %s1685_s2 = inlined_call_operand.vmem [shape: f32[1,128], index: 2, kind: input, shape index: {}]   ;;  %s1686_s3 = inlined_call_operand.hbm [shape: f32[128,128], index: 3, kind: input, shape index: {}]   ;;  %s1687_s4 = inlined_call_operand.vmem [shape: f32[1,128], index: 4, kind: input, shape index: {}]   ;;  %s1688_s5 = inlined_call_operand.hbm [shape: f32[128,128], index: 5, kind: input, shape index: {}]   ;;  %s1689_s6 = inlined_call_operand.vmem [shape: f32[1,128], index: 6, kind: input, shape index: {}]   ;;  %s1690_s7 = inlined_call_operand.vmem [shape: f32[20,1], index: 7, kind: output, shape index: {}]  }
   0x1   :  { %14 = vsyncpa [#allocation3 + $0x1], 0 }
   0x2   :  { %15 = vsyncpa [#allocation5], 0 }
   0x3   :  { %16 = vsyncpa [#allocation8], 0  ;;  %s1471_s24 = smov 0   ;;  %s1473_s25 = smov 0  }
   0x4   :  { %s1475_s26 = smov 0   ;;  %s1477_s27 = smov 0  }
   0x5 LB: > { %s1490_s28 = sadd.s32 4294967295, %s1389_s27   ;;  %s1493_s29 = sadd.s32 1, %s1389_s27   ;;  %s1389_s27 = sphi %s1477_s27, %s1709_s27   ;;  %s1385_s26 = sphi %s1475_s26, %s1708_s26   ;;  %s1381_s25 = sphi %s1473_s25, %s1707_s25   ;;  %s1377_s24 = sphi %s1471_s24, %s1706_s24  }
   0x6   : > { %s26_s30 = ssub.s32 %s1389_s27, %s1493_s29  ;;  %s29_s8 = sadd.s32 1, %s1385_s26 }
   0x7   : > { %p27_p0 = scmp.eq.s32.totalorder %s26_s30, 0  ;;  %p36_p1 = scmp.ne.s32.totalorder %s1385_s26, %s1381_s25 }
   0x8   : > { %p37_p2 = scmp.eq.s32.totalorder %s1389_s27, 0  ;;  %p42_p3 = scmp.ne.s32.totalorder %s1381_s25, %s1377_s24 }
   0x9   : > { %s1503_s9 = scalar_select %p27_p0, %s1385_s26, %s29_s8  }
   0xa   : > { %p1505_p4 = por %p37_p2, %p36_p1  ;;  %p1691_p5 = scmp.eq.s32.totalorder %s1490_s28, 0 }
   0xb   : > { %p192_p6 = scmp.eq.s32.totalorder %s1490_s28, 1  ;;  %p912_p7 = scmp.ge.s32.totalorder %s1389_s27, 1 }
   0xc   : > { %p1514_p8 = por %p1691_p5, %p42_p3  ;;  %p205_p9 = scmp.lt.s32.totalorder %s1389_s27, 3 }
   0xd   : > { %p1519_p10 = por %p192_p6, %p36_p1  ;;  %s1423_s14 = smov [#allocation4]  }
   0xe   : > { %s1695_s11 = scalar_select %p1514_p8, 1, 0 }
   0xf   : > { %s1696_s12 = scalar_select %p1519_p10, 1, 0 }
  0x10   : > { %p1523_p11 = pnand %p912_p7, %p205_p9  ;;  %s217_s15 = sshll.u32 %s1423_s14, 4  ;;  %s218_s15 = int_to_ptr.vmem [resolvable:$true] %s217_s15 }
  0x11   : > { %s1424_s17 = smov [#allocation6]   ;;  %s1425_s19 = smov [#allocation7]  }
  0x12   : > { %s1697_s13 = scalar_select %p1523_p11, 1, 0 }
  0x13   : > { %p1092_p12 = pneg %p1523_p11  ;;  %s233_s18 = sshll.u32 %s1424_s17, 4  ;;  %s234_s18 = int_to_ptr.vmem [resolvable:$true] %s233_s18 }
  0x14   : > { %s249_s20 = sshll.u32 %s1425_s19, 4  ;;  %s1222_s21 = scalar_lea.vmem %s218_s15, 512  ;;  %s250_s20 = int_to_ptr.vmem [resolvable:$true] %s249_s20 }
  0x15   : > { %p1531_p13 = pnand %p1092_p12, %p1691_p5  ;;  %p1223_p1 = scmp.ne.s32.totalorder %s218_s15, %s1222_s21 }
  0x16   : > { %p1230_p6 = scmp.lt.s32.totalorder %s218_s15, %s218_s15  ;;  %p1231_p7 = scmp.lt.s32.totalorder %s1222_s21, %s1222_s21 }
  0x17   : > { %p1213_p0 = pneg %p1531_p13 }
  0x18   : > { %p1232_p9 = por %p1231_p7, %p1230_p6 }
  0x19   : > { %p1225_p2 = pnand %p1223_p1, %p1213_p0 }
  0x1b   : > { %p1226_p3 = pneg %p1225_p2 }
  0x1d   : > { %p1233_p12 = pnand %p1232_p9, %p1226_p3 }
  0x1f   : > { %1236 = shalt.err (!%p1233_p12)
}
  0x20   : > { %s1426_s22 = smov 128   ;;  %s1427_s23 = smov 8  }
  0x21   : > { %1095 = dma.hbm_to_vmem [thread:$0]  (!%p1531_p13), %s1684_s1, 512, %s218_s15, [#allocation5], %s1426_s22, %s1426_s22, %s1427_s23  }
  0x22   : > { %s1248_s8 = scalar_lea.vmem %s234_s18, 2048  ;;  %p1256_p10 = scmp.lt.s32.totalorder %s234_s18, %s234_s18 }
  0x23   : > { %p1249_p5 = scmp.ne.s32.totalorder %s234_s18, %s1248_s8  ;;  %p1257_p8 = scmp.lt.s32.totalorder %s1248_s8, %s1248_s8 }
  0x25   : > { %p1251_p1 = pnand %p1249_p5, %p1213_p0  ;;  %p1258_p6 = por %p1257_p8, %p1256_p10 }
  0x27   : > { %p1252_p2 = pneg %p1251_p1 }
  0x29   : > { %p1259_p3 = pnand %p1258_p6, %p1252_p2 }
  0x2b   : > { %1262 = shalt.err (!%p1259_p3)
}
  0x2c   : > { %1098 = dma.hbm_to_vmem [thread:$0]  (!%p1531_p13), %s1686_s3, 2048, %s234_s18, [#allocation5], %s1426_s22, %s1426_s22, %s1427_s23  }
  0x2d   : > { %s1274_s15 = scalar_lea.vmem %s250_s20, 2048  ;;  %p1282_p12 = scmp.lt.s32.totalorder %s250_s20, %s250_s20 }
  0x2e   : > { %p1275_p7 = scmp.ne.s32.totalorder %s250_s20, %s1274_s15  ;;  %p1283_p1 = scmp.lt.s32.totalorder %s1274_s15, %s1274_s15 }
  0x30   : > { %p1277_p9 = pnand %p1275_p7, %p1213_p0  ;;  %p1284_p11 = por %p1283_p1, %p1282_p12 }
  0x32   : > { %p1278_p5 = pneg %p1277_p9 }
  0x34   : > { %p1285_p8 = pnand %p1284_p11, %p1278_p5 }
  0x36   : > { %1288 = shalt.err (!%p1285_p8)
}
  0x37   : > { %1101 = dma.hbm_to_vmem [thread:$0]  (!%p1531_p13), %s1688_s5, 2048, %s250_s20, [#allocation8], %s1426_s22, %s1426_s22, %s1427_s23  }
  0x38   : > { %p916_p10 = scmp.ge.s32.totalorder %s1389_s27, 2 }
  0x3a   : > { %262 = sbr.rel (%p916_p10) target bundleno = 95 (0x5f), region = 40 }
  0x3f   : > { %265 = sbr.rel (!%p1505_p4) target bundleno = 95 (0x5f), region = 44  ;;  %s266_s18 = sand.u32 (%p1505_p4), 1, %s1385_s26  }
  0x40   : > { %s918_s24 = sshll.u32 (%p1505_p4), %s1389_s27, 1  ;;  %s917_s30 = sshll.u32 (%p1505_p4), %s266_s18, 4 }
  0x41   : > { %s272_s8 = ssub.s32 (%p1505_p4), 3, %s918_s24  ;;  %s1569_s17 = scalar_lea.sflag (%p1505_p4), [#allocation3], %s266_s18 }
  0x42   : > { %p273_p11 = scmp.lt.s32.totalorder (%p1505_p4), %s272_s8, 2  ;;  %s270_s20 = scalar_lea.vmem (%p1505_p4), [#allocation2], %s917_s30 }
  0x44   : > { %s1711_s8 = smov (!%p273_p11, %s272_s8), 2 }
  0x45   : > { %s1566_s14 = sshll.u32 %s1711_s8, 7 }
  0x46   : > { %s277_s16 = ssub.s32 256, %s1566_s14 }
  0x47   : > { %278 = vsyncadd %s1569_s17, %s277_s16  ;;  %p920_p4 = scmp.ne.s32.totalorder %s1566_s14, 0  ;;  %s952_s10 = sshll.u32 %s1389_s27, 8 }
  0x48   : > { %s1577_s15 = scalar_lea.hbm %s1683_s0, %s952_s10  ;;  %s283_s19 = sshll.u32 %s270_s20, 4  ;;  %s1579_s19 = int_to_ptr.vmem [resolvable:$true] %s283_s19 }
  0x49   : > { %s1289_s21 = scalar_lea.hbm %s1577_s15, %s1566_s14  ;;  %s1293_s27 = scalar_lea.hbm %s1683_s0, 384 }
  0x4a   : > { %p1290_p13 = scmp.ne.s32.totalorder %s1577_s15, %s1289_s21  ;;  %p1294_p6 = scmp.lt.s32.totalorder %s1577_s15, %s1683_s0 }
  0x4b   : > { %p1295_p3 = scmp.lt.s32.totalorder %s1293_s27, %s1289_s21 }
  0x4c   : > { %p1291_p0 = pnand %p1290_p13, %p920_p4 }
  0x4d   : > { %p1296_p7 = por %p1295_p3, %p1294_p6 }
  0x4e   : > { %p1292_p2 = pneg %p1291_p0 }
  0x50   : > { %p1297_p9 = pnand %p1296_p7, %p1292_p2 }
  0x52   : > { %1300 = shalt.err (!%p1297_p9)
}
  0x53   : > { %s1301_s16 = scalar_lea.vmem %s1579_s19, %s1566_s14  ;;  %s1428_s20 = smov [#allocation2]  }
  0x54   : > { %p1302_p5 = scmp.ne.s32.totalorder %s1579_s19, %s1301_s16  ;;  %s1305_s10 = sshll.u32 %s1428_s20, 4  ;;  %s1306_s10 = int_to_ptr.vmem [resolvable:$false] %s1305_s10 }
  0x55   : > { %s1307_s22 = scalar_lea.vmem %s1306_s10, 512  ;;  %p1308_p8 = scmp.lt.s32.totalorder %s1579_s19, %s1306_s10 }
  0x56   : > { %p1303_p12 = pnand %p1302_p5, %p920_p4  ;;  %p1309_p10 = scmp.lt.s32.totalorder %s1307_s22, %s1301_s16 }
  0x58   : > { %p1304_p1 = pneg %p1303_p12  ;;  %p1310_p11 = por %p1309_p10, %p1308_p8 }
  0x5a   : > { %p1311_p13 = pnand %p1310_p11, %p1304_p1 }
  0x5c   : > { %1314 = shalt.err (!%p1311_p13)
}
  0x5d   : > { %s1429_s23 = smov 128   ;;  %s1430_s21 = smov 8  }
  0x5e   : > { %289 = dma.hbm_to_vmem [thread:$0]  (%p920_p4), %s1577_s15, %s1566_s14, %s1579_s19, %s1569_s17, %s1429_s23, %s1429_s23, %s1430_s21  }
  0x5f PF: > { %p1699_p0 = scmp.ne.s32.totalorder %s1697_s13, 0 }
  0x60   : > { %s297_s18 = sand.u32 (!%p1699_p0), 1, %s1381_s25   ;;  %p1700_p2 = scmp.ne.s32.totalorder (!%p1699_p0), %s1695_s11, 0 }
  0x61   : > { %295 = sbr.rel (%p1699_p0) target bundleno = 755 (0x2f3), region = 48  ;;  %s1608_s24 = sshll.u32 (!%p1699_p0), %s297_s18, 4 }
  0x62   : > { %s298_s27 = scalar_lea.sflag (!%p1699_p0), [#allocation3], %s297_s18  ;;  %s301_s30 = scalar_lea.vmem (!%p1699_p0), [#allocation2], %s1608_s24 }
  0x66   : > { %1364 = dma.done.wait (%p1700_p2), %s298_s27, 256  }
  0x67   : > { %1366 = vsyncadd (%p1700_p2), %s298_s27, 4294967040  ;;  %p1701_p4 = scmp.eq.s32.totalorder %s1490_s28, 0 }
  0x69   : > { %1368 = dma.done.wait (%p1701_p4), [#allocation5], 2560   ;;  %p1702_p6 = pmov %p1701_p4 }
  0x6a   : > { %p1703_p3 = pmov %p1701_p4 }
  0x6b   : > { %1370 = vsyncadd (%p1702_p6), [#allocation5], 4294964736 }
  0x6c   : > { %1372 = dma.done.wait (%p1703_p3), [#allocation8], 2048   ;;  %p1704_p7 = pmov %p1703_p3 }
  0x6d   : > { %vm366_vm0 = vcmask 261120   ;;  %v358_v0 = vld [vmem:[#allocation4 + $0x18] sm:$0xff]  ;;  %v357_v1 = vld [vmem:[#allocation4 + $0x10] sm:$0xff]  ;;  %v356_v3 = vld [vmem:[#allocation4 + $0x8] sm:$0xff]  ;;  %vm648_vm1 = vcmask 7168   ;;  %s1635_s8 = scalar_lea.vmem [#allocation9], %s1608_s24  }
  0x6e   : > { %1374 = vsyncadd (%p1704_p7), [#allocation8], 4294965248  ;;  %998 = vmatprep.subr.mxu0 %v358_v0  ;;  %v353_v2 = vld [vmem:[%s301_s30] sm:$0xff]  ;;  %v465_v4 = vld [vmem:[#allocation6 + $0x78] sm:$0xff]  ;;  %p1705_p9 = scmp.ne.s32.totalorder %s1696_s12, 0 }
  0x6f   : > { %999 = vmatpush3.msra.mxu0 %v358_v0  ;;  %1006 = vmatprep.mubr.msk.f32.mxu0 %vm366_vm0, %v353_v2  ;;  %v464_v5 = vld [vmem:[#allocation6 + $0x70] sm:$0xff]  ;;  %v355_v6 = vld [vmem:[#allocation4] sm:$0xff]  ;;  %v463_v7 = vld [vmem:[#allocation6 + $0x68] sm:$0xff]  ;;  %s936_s16 = sshll.u32 (%p1705_p9), %s1490_s28, 1  ;;  %s953_s20 = sshll.u32 (%p1705_p9), %s1490_s28, 4 }
  0x70   : > { %1000 = vmatprep.subr.mxu0 %v357_v1  ;;  %1009 = vmatprep.subr.mxu1 %v465_v4  ;;  %v354_v8 = vld [vmem:[%s301_s30 + $0x8] sm:$0xff]  ;;  %v462_v9 = vld [vmem:[#allocation6 + $0x60] sm:$0xff]  ;;  %v460_v11 = vld [vmem:[#allocation6 + $0x50] sm:$0xff]  ;;  %s659_s10 = ssub.s32 (%p1705_p9), 3, %s936_s16  ;;  %s1646_s21 = scalar_lea.vmem (%p1705_p9), %s1690_s7, %s953_s20  }
  0x71   : > { %1001 = vmatpush3.msra.mxu0 %v357_v1  ;;  %1010 = vmatpush3.msra.mxu1 %v465_v4  ;;  %v461_v10 = vld [vmem:[#allocation6 + $0x58] sm:$0xff]  ;;  %v459_v12 = vld [vmem:[#allocation6 + $0x48] sm:$0xff]  ;;  %v458_v13 = vld [vmem:[#allocation6 + $0x40] sm:$0xff]  ;;  %p660_p5 = scmp.lt.s32.totalorder (%p1705_p9), %s659_s10, 2 }
  0x72   : > { %1002 = vmatprep.subr.mxu0 %v356_v3  ;;  %1011 = vmatprep.subr.mxu1 %v464_v5  ;;  %v457_v14 = vld [vmem:[#allocation6 + $0x38] sm:$0xff]  ;;  %v456_v15 = vld [vmem:[#allocation6 + $0x30] sm:$0xff]  ;;  %v455_v16 = vld [vmem:[#allocation6 + $0x28] sm:$0xff] }
  0x73   : > { %1003 = vmatpush3.msra.mxu0 %v356_v3  ;;  %1012 = vmatpush3.msra.mxu1 %v464_v5  ;;  %v454_v17 = vld [vmem:[#allocation6 + $0x20] sm:$0xff]  ;;  %v453_v18 = vld [vmem:[#allocation6 + $0x18] sm:$0xff]  ;;  %v452_v19 = vld [vmem:[#allocation6 + $0x10] sm:$0xff] }
  0x74   : > { %1004 = vmatprep.subr.mxu0 %v355_v6  ;;  %1013 = vmatprep.subr.mxu1 %v463_v7  ;;  %v451_v20 = vld [vmem:[#allocation6 + $0x8] sm:$0xff]  ;;  %v450_v21 = vld [vmem:[#allocation6] sm:$0xff]  ;;  %v565_v22 = vld [vmem:[#allocation7 + $0x78] sm:$0xff] }
  0x75   : > { %1005 = vmatpush3.msra.mxu0 %v355_v6  ;;  %1014 = vmatpush3.msra.mxu1 %v463_v7  ;;  %v564_v23 = vld [vmem:[#allocation7 + $0x70] sm:$0xff]  ;;  %v563_v24 = vld [vmem:[#allocation7 + $0x68] sm:$0xff]  ;;  %v562_v25 = vld [vmem:[#allocation7 + $0x60] sm:$0xff] }
  0x76   : > { %1007 = vmatmul.mubr.msk.f32.vlgmr.msra.gmra.mxu0 %vm366_vm0, %v354_v8  ;;  %1015 = vmatprep.subr.mxu1 %v462_v9  ;;  %v561_v26 = vld [vmem:[#allocation7 + $0x58] sm:$0xff]  ;;  %v560_v27 = vld [vmem:[#allocation7 + $0x50] sm:$0xff]  ;;  %v559_v28 = vld [vmem:[#allocation7 + $0x48] sm:$0xff] }
  0x77   : > { %1016 = vmatpush3.msra.mxu1 %v462_v9  ;;  %1044 = vmatprep.subr.mxu0 %v565_v22  ;;  %v558_v29 = vld [vmem:[#allocation7 + $0x40] sm:$0xff]  ;;  %v557_v30 = vld [vmem:[#allocation7 + $0x38] sm:$0xff]  ;;  %v556_v31 = vld [vmem:[#allocation7 + $0x30] sm:$0xff] }
  0x78   : > { %1017 = vmatprep.subr.mxu1 %v461_v10  ;;  %1045 = vmatpush3.msra.mxu0 %v565_v22  ;;  %v555_v32 = vld [vmem:[#allocation7 + $0x28] sm:$0xff]  ;;  %v554_v33 = vld [vmem:[#allocation7 + $0x20] sm:$0xff]  ;;  %v553_v41 = vld [vmem:[#allocation7 + $0x18] sm:$0xff] }
  0x79   : > { %1018 = vmatpush3.msra.mxu1 %v461_v10  ;;  %1046 = vmatprep.subr.mxu0 %v564_v23  ;;  %v930_v34 = vld [vmem:[%s1685_s2] ss:$0 sm:$0xff]  ;;  %v552_v42 = vld [vmem:[#allocation7 + $0x10] sm:$0xff]  ;;  %v551_v43 = vld [vmem:[#allocation7 + $0x8] sm:$0xff] }
  0x7a   : > { %1019 = vmatprep.subr.mxu1 %v460_v11  ;;  %1047 = vmatpush3.msra.mxu0 %v564_v23  ;;  %v550_v44 = vld [vmem:[#allocation7] sm:$0xff] }
  0x7b   : > { %1020 = vmatpush3.msra.mxu1 %v460_v11  ;;  %1048 = vmatprep.subr.mxu0 %v563_v24  ;;  %v933_v45 = vld [vmem:[%s1687_s4] ss:$0 sm:$0xff] }
  0x7c   : > { %1021 = vmatprep.subr.mxu1 %v459_v12  ;;  %1049 = vmatpush3.msra.mxu0 %v563_v24  ;;  %v934_v52 = vld [vmem:[%s1689_s6] ss:$0 sm:$0xff] }
  0x7d   : > { %1022 = vmatpush3.msra.mxu1 %v459_v12  ;;  %1050 = vmatprep.subr.mxu0 %v562_v25 }
  0x7e   : > { %1023 = vmatprep.subr.mxu1 %v458_v13  ;;  %1051 = vmatpush3.msra.mxu0 %v562_v25 }
  0x7f   : > { %1024 = vmatpush3.msra.mxu1 %v458_v13  ;;  %1052 = vmatprep.subr.mxu0 %v561_v26 }
  0x80   : > { %1025 = vmatprep.subr.mxu1 %v457_v14  ;;  %1053 = vmatpush3.msra.mxu0 %v561_v26 }
  0x81   : > { %1026 = vmatpush3.msra.mxu1 %v457_v14  ;;  %1054 = vmatprep.subr.mxu0 %v560_v27 }
  0x82   : > { %1027 = vmatprep.subr.mxu1 %v456_v15  ;;  %1055 = vmatpush3.msra.mxu0 %v560_v27 }
  0x83   : > { %1028 = vmatpush3.msra.mxu1 %v456_v15  ;;  %1056 = vmatprep.subr.mxu0 %v559_v28 }
  0x84   : > { %1029 = vmatprep.subr.mxu1 %v455_v16  ;;  %1057 = vmatpush3.msra.mxu0 %v559_v28 }
  0x85   : > { %1030 = vmatpush3.msra.mxu1 %v455_v16  ;;  %1058 = vmatprep.subr.mxu0 %v558_v29 }
  0x86   : > { %1031 = vmatprep.subr.mxu1 %v454_v17  ;;  %1059 = vmatpush3.msra.mxu0 %v558_v29 }
  0x87   : > { %1032 = vmatpush3.msra.mxu1 %v454_v17  ;;  %1060 = vmatprep.subr.mxu0 %v557_v30 }
  0x88   : > { %1033 = vmatprep.subr.mxu1 %v453_v18  ;;  %1061 = vmatpush3.msra.mxu0 %v557_v30 }
  0x89   : > { %1034 = vmatpush3.msra.mxu1 %v453_v18  ;;  %1062 = vmatprep.subr.mxu0 %v556_v31 }
  0x8a   : > { %1035 = vmatprep.subr.mxu1 %v452_v19  ;;  %1063 = vmatpush3.msra.mxu0 %v556_v31 }
  0x8b   : > { %1036 = vmatpush3.msra.mxu1 %v452_v19  ;;  %1064 = vmatprep.subr.mxu0 %v555_v32 }
  0x8c   : > { %1037 = vmatprep.subr.mxu1 %v451_v20  ;;  %1065 = vmatpush3.msra.mxu0 %v555_v32 }
  0x8d   : > { %1038 = vmatpush3.msra.mxu1 %v451_v20  ;;  %1066 = vmatprep.subr.mxu0 %v554_v33 }
  0x8e   : > { %1039 = vmatprep.subr.mxu1 %v450_v21  ;;  %1067 = vmatpush3.msra.mxu0 %v554_v33 }
  0x8f   : > { %1040 = vmatpush3.msra.mxu1 %v450_v21  ;;  %1068 = vmatprep.subr.mxu0 %v553_v41 }
  0x90   : > { %1069 = vmatpush3.msra.mxu0 %v553_v41 }
  0x91   : > { %1070 = vmatprep.subr.mxu0 %v552_v42 }
  0x92   : > { %1071 = vmatpush3.msra.mxu0 %v552_v42 }
  0x93   : > { %1072 = vmatprep.subr.mxu0 %v551_v43 }
  0x94   : > { %1073 = vmatpush3.msra.mxu0 %v551_v43 }
  0x95   : > { %1074 = vmatprep.subr.mxu0 %v550_v44 }
  0x96   : > { %1075 = vmatpush3.msra.mxu0 %v550_v44 }
 0x136   : > { %v1008_v35 = vpop.f32.mrf.mxu0 }
 0x137   : > { %v445_v36 = vadd.f32 %v1008_v35, %v930_v34 }
 0x138   : > { %v439_v37 = vpop.f32.mrf.mxu0 }
 0x139   : > { %v440_v38 = vadd.f32 %v930_v34, %v439_v37  ;;  %v449_v40 = vmax.f32 %v445_v36, 0.0 }
 0x13b   : > { %v448_v39 = vmax.f32 %v440_v38, 0.0 }
 0x13d   : > { %1041 = vmatprep.mubr.f32.mxu1 %v448_v39 }
 0x13e   : > { %1042 = vmatmul.mubr.f32.vlgmr.msra.gmra.mxu1 %v449_v40 }
 0x1fe   : > { %v1043_v46 = vpop.f32.mrf.mxu1 }
 0x1ff   : > { %v545_v47 = vadd.f32 %v1043_v46, %v933_v45 }
 0x200   : > { %v539_v48 = vpop.f32.mrf.mxu1 }
 0x201   : > { %v540_v49 = vadd.f32 %v933_v45, %v539_v48  ;;  %v549_v51 = vmax.f32 %v545_v47, 0.0 }
 0x203   : > { %v548_v50 = vmax.f32 %v540_v49, 0.0 }
 0x205   : > { %1076 = vmatprep.mubr.f32.mxu0 %v548_v50 }
 0x206   : > { %1077 = vmatmul.mubr.f32.vlgmr.msra.gmra.mxu0 %v549_v51 }
 0x2c6   : > { %v1078_v53 = vpop.f32.mrf.mxu0 }
 0x2c7   : > { %v645_v54 = vadd.f32 %v1078_v53, %v934_v52  ;;  %657 = sbr.rel (!%p1705_p9) target bundleno = 755 (0x2f3), region = 68 }
 0x2c8   : > { %v639_v55 = vpop.f32.mrf.mxu0 }
 0x2c9   : > { %650 = vst.msk [vmem:[%s1635_s8 + $0x8] sm:$0xff] %vm648_vm1, %v645_v54  ;;  %v640_v56 = vadd.f32 %v934_v52, %v639_v55 }
 0x2cb   : > { %649 = vst.msk [vmem:[%s1635_s8] sm:$0xff] %vm648_vm1, %v640_v56 }
 0x2cc   : > { %s1713_s10 = smov (!%p660_p5, %s659_s10), 2 }
 0x2cd   : > { %s937_s18 = sshll.u32 %s1713_s10, 7 }
 0x2ce   : > { %p940_p12 = scmp.eq.s32.totalorder %s937_s18, 0 }
 0x2cf   : > { %s1652_s12 = sshrl.u32 (!%p940_p12), %s1713_s10, 1 }
 0x2d0   : > { %668 = sbr.rel (%p940_p12) target bundleno = 755 (0x2f3), region = 72  ;;  %p941_p1 = scmp.le.s32.totalorder (!%p940_p12), %s1652_s12, 0 }
 0x2d5   : > { %837 = sbr.rel (%p941_p1) target bundleno = 738 (0x2e2), region = 154  ;;  %s1391_s28 = smov (!%p941_p1), %s1646_s21  }
 0x2d6   : > { %s1395_s24 = smov (!%p941_p1), %s1635_s8   ;;  %s1399_s27 = smov (!%p941_p1), 0  }
 0x2d7   : > { %s1403_s30 = smov (!%p941_p1), 0  }
 0x2da LB: >> { %v733_v57 = vld [vmem:[%s1397_s24] sm:$0xff]  ;;  %v735_v58 = vld [vmem:[%s1397_s24 + $0x8] sm:$0xff]  ;;  %s737_s11 = sadd.s32 1, %s1401_s27  ;;  %s727_s30 = sadd.s32 1, %s1405_s30   ;;  %s1405_s30 = sphi %s1403_s30, %s727_s30   ;;  %s1401_s27 = sphi %s1399_s27, %s1400_s27   ;;  %s1397_s24 = sphi %s1395_s24, %s742_s24   ;;  %s1393_s28 = sphi %s1391_s28, %s743_s28  }
 0x2db   : >> { %734 = vst [vmem:[%s1393_s28] sm:$0xff] %v733_v57  ;;  %736 = vst [vmem:[%s1393_s28 + $0x8] sm:$0xff] %v735_v58  ;;  %p738_p8 = scmp.ge.s32.totalorder %s737_s11, %s1652_s12  ;;  %p726_p10 = scmp.ge.s32.totalorder %s727_s30, %s1652_s12 }
 0x2dd   : >> { %s1715_s11 = smov (%p738_p8, %s737_s11), 0  ;;  %729 = sbr.rel (!%p726_p10) target bundleno = 730 (0x2da), region = 160 }
 0x2de   : >> { %s942_s13 = sshll.u32 %s1715_s11, 4  ;;  %s1400_s27 = smov %s1715_s11  }
 0x2df   : >> { %s742_s24 = scalar_lea.vmem %s1635_s8, %s942_s13 [#allocation9]   ;;  %s743_s28 = scalar_lea.vmem %s1646_s21, %s942_s13  }
 0x2e2 PF: > { %s1662_s14 = sand.u32 1, %s1713_s10   ;;  %s954_s17 = sshll.u32 %s1652_s12, 4 }
 0x2e3   : > { %s748_s15 = scalar_lea.vmem %s1635_s8, %s954_s17 [#allocation9]   ;;  %s750_s19 = scalar_lea.vmem %s1646_s21, %s954_s17  }
 0x2e4   : > { %p947_p11 = scmp.le.s32.totalorder %s1662_s14, 0 }
 0x2e5   : > { %s1407_s16 = smov (!%p947_p11), %s750_s19   ;;  %s1411_s20 = smov (!%p947_p11), %s748_s15  }
 0x2e6   : > { %851 = sbr.rel (%p947_p11) target bundleno = 755 (0x2f3), region = 165  ;;  %s1415_s22 = smov (!%p947_p11), 0  }
 0x2e7   : > { %s1419_s23 = smov (!%p947_p11), 0  }
 0x2eb LB: >> { %v760_v59 = vld [vmem:[%s1413_s20] sm:$0xff]  ;;  %s762_s10 = sadd.s32 1, %s1417_s22  ;;  %s754_s23 = sadd.s32 1, %s1421_s23   ;;  %s1421_s23 = sphi %s1419_s23, %s754_s23   ;;  %s1417_s22 = sphi %s1415_s22, %s1416_s22   ;;  %s1413_s20 = sphi %s1411_s20, %s767_s20   ;;  %s1409_s16 = sphi %s1407_s16, %s768_s16  }
 0x2ec   : >> { %761 = vst [vmem:[%s1409_s16] sm:$0xff] %v760_v59  ;;  %p763_p13 = scmp.ge.s32.totalorder %s762_s10, %s1662_s14  ;;  %p753_p0 = scmp.ge.s32.totalorder %s754_s23, %s1662_s14 }
 0x2ee   : >> { %s1717_s10 = smov (%p763_p13, %s762_s10), 0  ;;  %756 = sbr.rel (!%p753_p0) target bundleno = 747 (0x2eb), region = 171 }
 0x2ef   : >> { %s948_s8 = sshll.u32 %s1717_s10, 3  ;;  %s1416_s22 = smov %s1717_s10  }
 0x2f0   : >> { %s767_s20 = scalar_lea.vmem %s748_s15, %s948_s8 [#allocation9]   ;;  %s768_s16 = scalar_lea.vmem %s750_s19, %s948_s8  }
 0x2f3 PF: > { %p19_p2 = scmp.ge.s32.totalorder %s1493_s29, 4   ;;  %s1706_s24 = smov %s1381_s25 }
 0x2f4   : > { %s1707_s25 = smov %s1385_s26  ;;  %s1708_s26 = smov %s1503_s9 }
 0x2f5   : > { %s1709_s27 = smov %s1493_s29  ;;  %21 = sbr.rel (!%p19_p2) target bundleno = 5 (0x5), region = 182 }
 0x2fa   :  { %784 = vsyncpa [#allocation3], 1 }
 0x2fb   :  { %786 = vsyncpa [#allocation3 + $0x1], 1 }
 0x2fc   :  { %787 = vsyncpa [#allocation5], 1 }
 0x2fd   :  { %788 = vsyncpa [#allocation8], 1 }

</bundles_post_ra>
